<compile_context>
chip_gen: v5e
topology: v5e:2x2
jax: 0.10.0
libtpu: 0.0.40
codegen_flags: <defaults>
</compile_context>

<pallas_src>
import jax
import jax.numpy as jnp
from jax.experimental import pallas as pl
from jax.experimental.pallas import tpu as pltpu


def _round_up(n, m):
    return ((n + m - 1) // m) * m


def _mlp_kernel(x_ref, w1_ref, b1_ref, w3_ref, b3_ref, wl_ref, bl_ref, o_ref):
    # ---- layer_1: Linear + ReLU (its BatchNorm is folded into w3/b3) ----
    # Cast x -> bf16 in-kernel (convert hides under the MXU pass; doing it in
    # the wrapper would be an extra full HBM pass over x).
    x = x_ref[...].astype(jnp.bfloat16)
    h = jnp.dot(x, w1_ref[...], preferred_element_type=jnp.float32)
    h = jnp.maximum(h + b1_ref[...], 0.0)

    # ---- layer_3: Linear (BN1 folded) + ReLU (its BN folded into wl/bl) ----
    h = jnp.dot(h.astype(jnp.bfloat16), w3_ref[...],
                preferred_element_type=jnp.float32)
    h = jnp.maximum(h + b3_ref[...], 0.0)

    # ---- last_linear (half_hidden -> 1): VPU multiply + lane reduce instead
    # of an N=1 MXU pass.  Bound transform already folded into wl/bl. ----
    z = jnp.sum(h * wl_ref[...], axis=-1, keepdims=True) + bl_ref[...]
    o_ref[...] = jax.nn.sigmoid(z)


def fuse_params(params, *, lower_bound=0.0, upper_bound=10.5):
    """One-time parameter prep (depends only on params, not x).

    Folds the inference-mode BatchNorm affines into the *next* linear layers
    and the sigmoid bound transform into the last layer, and casts matmul
    operands to bf16:   (h*s + t) @ W + b == h @ (s[:,None]*W) + (t@W + b)
    """
    (w1, b1, s1, t1, w3, b3, s3, t3, wl, bl) = params
    hidden = w1.shape[1]
    half = w3.shape[1]
    scale = float(upper_bound) - float(lower_bound)

    w1_bf = w1.astype(jnp.bfloat16)                                  # (K, hidden)
    b1_f = b1.astype(jnp.float32).reshape(1, hidden)                 # (1, hidden)

    w3f = (s1.reshape(hidden, 1) * w3).astype(jnp.bfloat16)          # (hidden, half)
    b3f = (b3 + t1 @ w3).astype(jnp.float32).reshape(1, half)        # (1, half)

    wlf = (scale * s3.reshape(1, half) * wl.reshape(1, half)).astype(jnp.float32)
    blf = (scale * (bl + t3 @ wl) + float(lower_bound)).astype(jnp.float32)
    blf = blf.reshape(1, 1)

    return (w1_bf, b1_f, w3f, b3f, wlf, blf)


# When a single tile would cover this many rows or more, split into >=2 grid
# steps so v7x's second TensorCore gets work ("parallel" needs >=2 steps).
_MEGACORE_SPLIT_ROWS = 2048


def mlp_forward(x, fused_params, *, block_b=2048):
    """x: (B, num_inputs) float32, fused_params from fuse_params().
    Returns (B, 1) float32.  Inference-mode semantics (Dropout = identity,
    BatchNorm1d = running-stat affine, folded into the linear layers)."""
    (w1_bf, b1_f, w3f, b3f, wlf, blf) = fused_params
    B, num_inputs = x.shape
    hidden = w1_bf.shape[1]
    half = w3f.shape[1]

    # Batch tile: multiple of 8 (f32 sublanes); big tiles amortize per-step cost.
    tb = max(8, min(int(block_b), _round_up(B, 8)))
    tb = _round_up(tb, 8)
    n_blocks = pl.cdiv(B, tb)

    # v7x megacore: ensure >=2 grid steps when the batch is large enough
    # (no-op for v5e/v6e-sized tests; on 1-TC chips fewer steps is better,
    # and this only triggers when the batch is already large).
    if n_blocks == 1 and B >= _MEGACORE_SPLIT_ROWS:
        tb = _round_up(pl.cdiv(B, 2), 16)
        n_blocks = pl.cdiv(B, tb)

    return pl.pallas_call(
        _mlp_kernel,
        out_shape=jax.ShapeDtypeStruct((B, 1), jnp.float32),
        grid=(n_blocks,),
        in_specs=[
            pl.BlockSpec((tb, num_inputs), lambda i: (i, 0)),      # x (f32, batch-tiled)
            pl.BlockSpec((num_inputs, hidden), lambda i: (0, 0)),  # w1 (bf16, VMEM-resident)
            pl.BlockSpec((1, hidden), lambda i: (0, 0)),           # b1
            pl.BlockSpec((hidden, half), lambda i: (0, 0)),        # w3 (BN1 folded, bf16)
            pl.BlockSpec((1, half), lambda i: (0, 0)),             # b3 (BN1 folded)
            pl.BlockSpec((1, half), lambda i: (0, 0)),             # wl row (BN3 + bound folded)
            pl.BlockSpec((1, 1), lambda i: (0, 0)),                # bl (BN3 + bound folded)
        ],
        out_specs=pl.BlockSpec((tb, 1), lambda i: (i, 0)),
        compiler_params=pltpu.CompilerParams(
            dimension_semantics=("parallel",),       # batch axis across TCs (v7x)
            vmem_limit_bytes=48 * 1024 * 1024,       # room for multi-K-row tiles,
        ),                                           # still < v7x's 64 MiB VMEM
    )(x, w1_bf, b1_f, w3f, b3f, wlf, blf)


def init_params(key, num_inputs, hidden_size):
    """Deterministic synthetic parameters (same shapes as the torch module)."""
    half = hidden_size // 2
    ks = jax.random.split(key, 8)

    # Linear weights stored already transposed to (in, out) for x @ W.
    w1 = jax.random.normal(ks[0], (num_inputs, hidden_size), jnp.float32) * 0.05
    b1 = jax.random.normal(ks[1], (1, hidden_size), jnp.float32) * 0.05
    w3 = jax.random.normal(ks[2], (hidden_size, half), jnp.float32) * 0.05
    b3 = jax.random.normal(ks[3], (1, half), jnp.float32) * 0.05
    wl = jax.random.normal(ks[4], (half, 1), jnp.float32) * 0.05
    bl = jax.random.normal(ks[5], (1, 1), jnp.float32) * 0.05

    # BatchNorm1d (inference) expressed as affine scale/shift:
    #   y = (x - mean) / sqrt(var + eps) * gamma + beta  ==  x * s + t
    eps = 1e-5

    def fold_bn(key, n):
        k1, k2, k3, k4 = jax.random.split(key, 4)
        gamma = 1.0 + 0.1 * jax.random.normal(k1, (n,), jnp.float32)
        beta = 0.1 * jax.random.normal(k2, (n,), jnp.float32)
        mean = 0.1 * jax.random.normal(k3, (n,), jnp.float32)
        var = jnp.abs(1.0 + 0.1 * jax.random.normal(k4, (n,), jnp.float32))
        s = gamma / jnp.sqrt(var + eps)
        t = beta - mean * s
        return s.reshape(1, n), t.reshape(1, n)

    s1, t1 = fold_bn(ks[6], hidden_size)
    s3, t3 = fold_bn(ks[7], half)

    return (w1, b1, s1, t1, w3, b3, s3, t3, wl, bl)


if __name__ == "__main__":
    # TODO(synk): training-mode Dropout / batch-statistics BatchNorm are not
    # reproduced; the kernel implements the inference-mode forward pass.
    B, NUM_INPUTS, HIDDEN = 8, 64, 256
    LB, UB = 0.0, 10.5

    key = jax.random.PRNGKey(0)
    kx, kp = jax.random.split(key)
    x = jax.random.normal(kx, (B, NUM_INPUTS), jnp.float32)
    params = init_params(kp, NUM_INPUTS, HIDDEN)

    # One-time parameter prep (BN + bound folding, bf16 casts) -- hoisted out
    # of the per-call path.
    fused = fuse_params(params, lower_bound=LB, upper_bound=UB)

    out = jax.block_until_ready(mlp_forward(x, fused))

    # Pure-JAX f32 reference matching the torch forward exactly
    # (bound applied *before* the sigmoid, as in MLPModel.forward).
    (w1, b1, s1, t1, w3, b3, s3, t3, wl, bl) = params

    def ref_forward(xi):
        h = jnp.maximum(xi @ w1 + b1, 0.0) * s1 + t1
        h = jnp.maximum(h @ w3 + b3, 0.0) * s3 + t3
        return jax.nn.sigmoid((h @ wl + bl) * (UB - LB) + LB)

    ref = ref_forward(x)
    assert out.shape == (B, 1)
    assert bool(jnp.all(jnp.isfinite(out)))
    # bf16 matmul operands vs. f32 reference -> loose-ish tolerance.
    assert jnp.allclose(out, ref, atol=2e-2), float(jnp.max(jnp.abs(out - ref)))

    # Exercise the multi-tile + ragged-last-block path (grid > 1, B % tile != 0).
    B2 = 300
    x2 = jax.random.normal(jax.random.PRNGKey(1), (B2, NUM_INPUTS), jnp.float32)
    out2 = jax.block_until_ready(mlp_forward(x2, fused, block_b=128))
    ref2 = ref_forward(x2)
    assert out2.shape == (B2, 1)
    assert bool(jnp.all(jnp.isfinite(out2)))
    assert jnp.allclose(out2, ref2, atol=2e-2), float(jnp.max(jnp.abs(out2 - ref2)))

    print("KERNEL_OK")
</pallas_src>

<mosaic_0001>
module attributes {stable_mosaic.version = 11 : i64} {
  func.func @_mlp_kernel(%arg0: i32, %arg1: memref<8x64xf32, #tpu.memory_space<vmem>>, %arg2: memref<64x256xbf16, #tpu.memory_space<vmem>>, %arg3: memref<1x256xf32, #tpu.memory_space<vmem>>, %arg4: memref<256x128xbf16, #tpu.memory_space<vmem>>, %arg5: memref<1x128xf32, #tpu.memory_space<vmem>>, %arg6: memref<1x128xf32, #tpu.memory_space<vmem>>, %arg7: memref<1x1xf32, #tpu.memory_space<vmem>>, %arg8: memref<8x1xf32, #tpu.memory_space<vmem>>) attributes {dimension_semantics = [#tpu.dimension_semantics<parallel>], iteration_bounds = array<i64: 1>, scalar_prefetch = 0 : i64, scratch_operands = 0 : i64, tpu.core_type = #tpu.core_type<tc>, window_params = [{transform_indices = @transform_0, window_bounds = array<i64: 8, 64>}, {pipeline_mode = #tpu.pipeline_mode<synchronous>, transform_indices = @transform_1, window_bounds = array<i64: 64, 256>}, {pipeline_mode = #tpu.pipeline_mode<synchronous>, transform_indices = @transform_2, window_bounds = array<i64: 1, 256>}, {pipeline_mode = #tpu.pipeline_mode<synchronous>, transform_indices = @transform_3, window_bounds = array<i64: 256, 128>}, {pipeline_mode = #tpu.pipeline_mode<synchronous>, transform_indices = @transform_4, window_bounds = array<i64: 1, 128>}, {pipeline_mode = #tpu.pipeline_mode<synchronous>, transform_indices = @transform_5, window_bounds = array<i64: 1, 128>}, {pipeline_mode = #tpu.pipeline_mode<synchronous>, transform_indices = @transform_6, window_bounds = array<i64: 1, 1>}, {transform_indices = @transform_7, window_bounds = array<i64: 8, 1>}]} {
    %c0 = arith.constant 0 : index
    %c0_0 = arith.constant 0 : index
    %0 = vector.load %arg1[%c0, %c0_0] : memref<8x64xf32, #tpu.memory_space<vmem>>, vector<8x64xf32>
    %1 = arith.truncf %0 : vector<8x64xf32> to vector<8x64xbf16>
    %c0_1 = arith.constant 0 : index
    %c0_2 = arith.constant 0 : index
    %2 = vector.load %arg2[%c0_1, %c0_2] : memref<64x256xbf16, #tpu.memory_space<vmem>>, vector<64x256xbf16>
    %cst = arith.constant dense<0.000000e+00> : vector<8x256xf32>
    %3 = tpu.matmul %1, %2, %cst {dimension_numbers = #tpu.dot_dimension_numbers<[1], [0], [0], [1], [0, 0, 1, 1], [], []>} : vector<8x64xbf16>, vector<64x256xbf16>, vector<8x256xf32> -> vector<8x256xf32>
    %c0_3 = arith.constant 0 : index
    %c0_4 = arith.constant 0 : index
    %4 = vector.load %arg3[%c0_3, %c0_4] : memref<1x256xf32, #tpu.memory_space<vmem>>, vector<1x256xf32>
    %5 = vector.broadcast %4 : vector<1x256xf32> to vector<8x256xf32>
    %6 = arith.addf %3, %5 : vector<8x256xf32>
    %cst_5 = arith.constant 0.000000e+00 : f32
    %7 = vector.broadcast %cst_5 : f32 to vector<8x256xf32>
    %8 = arith.maximumf %6, %7 : vector<8x256xf32>
    %9 = arith.truncf %8 : vector<8x256xf32> to vector<8x256xbf16>
    %c0_6 = arith.constant 0 : index
    %c0_7 = arith.constant 0 : index
    %10 = vector.load %arg4[%c0_6, %c0_7] : memref<256x128xbf16, #tpu.memory_space<vmem>>, vector<256x128xbf16>
    %cst_8 = arith.constant dense<0.000000e+00> : vector<8x128xf32>
    %11 = tpu.matmul %9, %10, %cst_8 {dimension_numbers = #tpu.dot_dimension_numbers<[1], [0], [0], [1], [0, 0, 1, 1], [], []>} : vector<8x256xbf16>, vector<256x128xbf16>, vector<8x128xf32> -> vector<8x128xf32>
    %c0_9 = arith.constant 0 : index
    %c0_10 = arith.constant 0 : index
    %12 = vector.load %arg5[%c0_9, %c0_10] : memref<1x128xf32, #tpu.memory_space<vmem>>, vector<1x128xf32>
    %13 = vector.broadcast %12 : vector<1x128xf32> to vector<8x128xf32>
    %14 = arith.addf %11, %13 : vector<8x128xf32>
    %cst_11 = arith.constant 0.000000e+00 : f32
    %15 = vector.broadcast %cst_11 : f32 to vector<8x128xf32>
    %16 = arith.maximumf %14, %15 : vector<8x128xf32>
    %c0_12 = arith.constant 0 : index
    %c0_13 = arith.constant 0 : index
    %17 = vector.load %arg6[%c0_12, %c0_13] : memref<1x128xf32, #tpu.memory_space<vmem>>, vector<1x128xf32>
    %18 = vector.broadcast %17 : vector<1x128xf32> to vector<8x128xf32>
    %19 = arith.mulf %16, %18 : vector<8x128xf32>
    %cst_14 = arith.constant dense<0.000000e+00> : vector<8xf32>
    %20 = vector.multi_reduction <add>, %19, %cst_14 [1] : vector<8x128xf32> to vector<8xf32>
    %21 = vector.shape_cast %20 : vector<8xf32> to vector<8x1xf32>
    %c0_15 = arith.constant 0 : index
    %c0_16 = arith.constant 0 : index
    %22 = vector.load %arg7[%c0_15, %c0_16] : memref<1x1xf32, #tpu.memory_space<vmem>>, vector<1x1xf32>
    %23 = vector.broadcast %22 : vector<1x1xf32> to vector<8x1xf32>
    %24 = arith.addf %21, %23 : vector<8x1xf32>
    %25 = arith.negf %24 : vector<8x1xf32>
    %26 = math.exp %25 : vector<8x1xf32>
    %cst_17 = arith.constant 1.000000e+00 : f32
    %27 = vector.broadcast %cst_17 : f32 to vector<8x1xf32>
    %28 = arith.addf %27, %26 : vector<8x1xf32>
    %29 = arith.divf %27, %28 : vector<8x1xf32>
    %c0_18 = arith.constant 0 : index
    %c0_19 = arith.constant 0 : index
    %30 = vector.load %arg8[%c0_18, %c0_19] : memref<8x1xf32, #tpu.memory_space<vmem>>, vector<8x1xf32>
    tpu.vector_store %arg8[%c0_18, %c0_19], %29 {strides = array<i32>} : memref<8x1xf32, #tpu.memory_space<vmem>>, vector<8x1xf32>,
    return
  }
  func.func @transform_0(%arg0: i32) -> (i32, i32) {
    %c0_i32 = arith.constant 0 : i32
    %c0_i32_0 = arith.constant 0 : i32
    return %arg0, %c0_i32 : i32, i32
  }
  func.func @transform_1(%arg0: i32) -> (i32, i32) {
    %c0_i32 = arith.constant 0 : i32
    %c0_i32_0 = arith.constant 0 : i32
    %c0_i32_1 = arith.constant 0 : i32
    return %c0_i32, %c0_i32_0 : i32, i32
  }
  func.func @transform_2(%arg0: i32) -> (i32, i32) {
    %c0_i32 = arith.constant 0 : i32
    %c0_i32_0 = arith.constant 0 : i32
    %c0_i32_1 = arith.constant 0 : i32
    return %c0_i32, %c0_i32_0 : i32, i32
  }
  func.func @transform_3(%arg0: i32) -> (i32, i32) {
    %c0_i32 = arith.constant 0 : i32
    %c0_i32_0 = arith.constant 0 : i32
    %c0_i32_1 = arith.constant 0 : i32
    return %c0_i32, %c0_i32_0 : i32, i32
  }
  func.func @transform_4(%arg0: i32) -> (i32, i32) {
    %c0_i32 = arith.constant 0 : i32
    %c0_i32_0 = arith.constant 0 : i32
    %c0_i32_1 = arith.constant 0 : i32
    return %c0_i32, %c0_i32_0 : i32, i32
  }
  func.func @transform_5(%arg0: i32) -> (i32, i32) {
    %c0_i32 = arith.constant 0 : i32
    %c0_i32_0 = arith.constant 0 : i32
    %c0_i32_1 = arith.constant 0 : i32
    return %c0_i32, %c0_i32_0 : i32, i32
  }
  func.func @transform_6(%arg0: i32) -> (i32, i32) {
    %c0_i32 = arith.constant 0 : i32
    %c0_i32_0 = arith.constant 0 : i32
    %c0_i32_1 = arith.constant 0 : i32
    return %c0_i32, %c0_i32_0 : i32, i32
  }
  func.func @transform_7(%arg0: i32) -> (i32, i32) {
    %c0_i32 = arith.constant 0 : i32
    %c0_i32_0 = arith.constant 0 : i32
    return %arg0, %c0_i32 : i32, i32
  }
}

</mosaic_0001>

<bundles_post_ra>
// kernel: tpu_custom_call.1
= control target key start
LH: loop header
LB: loop body
LE: loop exit
PB: predicated region body
PF: predicated region fallthrough
CT: control target
= control target key end

     0   :  { %s646_s0 = inlined_call_operand.hbm [shape: f32[8,64], index: 0, kind: input, shape index: {}]   ;;  %s647_s1 = inlined_call_operand.hbm [shape: bf16[64,256], index: 1, kind: input, shape index: {}]   ;;  %s648_s2 = inlined_call_operand.vmem [shape: f32[1,256], index: 2, kind: input, shape index: {}]   ;;  %s649_s3 = inlined_call_operand.hbm [shape: bf16[256,128], index: 3, kind: input, shape index: {}]   ;;  %s650_s4 = inlined_call_operand.vmem [shape: f32[1,128], index: 4, kind: input, shape index: {}]   ;;  %s651_s5 = inlined_call_operand.vmem [shape: f32[1,128], index: 5, kind: input, shape index: {}]   ;;  %s652_s6 = inlined_call_operand.<no memory space> [shape: f32[1,1], index: 6, kind: input, shape index: {}]   ;;  %s653_s7 = inlined_call_operand.vmem [shape: f32[8,1], index: 7, kind: output, shape index: {}]  }
   0x1   :  { %v12_v0 = vstv %s652_s6 }
   0x2   :  { %13 = vst [vmem:[#allocation2] sm:$0x1] %v12_v0 }
   0x3   :  { %14 = vsyncpa [#allocation4], 0 }
   0x4   :  { %15 = vsyncpa [#allocation6], 0  ;;  %s31_s28 = sshll.u32 %s647_s1, 4  ;;  %s575_s29 = smov [#allocation5]   ;;  %s32_s28 = int_to_ptr.hbm [resolvable:$true] %s31_s28 }
   0x5   :  { %s33_s30 = sshll.u32 %s575_s29, 4  ;;  %s21_s10 = sshll.u32 %s646_s0, 4  ;;  %s34_s30 = int_to_ptr.vmem [resolvable:$true] %s33_s30  ;;  %s22_s10 = int_to_ptr.hbm [resolvable:$true] %s21_s10 }
   0x6   :  { %s576_s11 = smov 128   ;;  %s577_s12 = smov 8  }
   0x7   :  { %39 = dma.hbm_to_vmem [thread:$0]  %s32_s28, 1024, %s34_s30, [#allocation6], %s576_s11, %s576_s11, %s577_s12  }
   0x8   :  { %s578_s6 = smov [#allocation3]   ;;  %s46_s16 = sshll.u32 %s649_s3, 4  ;;  %s47_s16 = int_to_ptr.hbm [resolvable:$true] %s46_s16 }
   0x9   :  { %s23_s13 = sshll.u32 %s578_s6, 4  ;;  %s579_s1 = smov [#allocation7]   ;;  %s24_s13 = int_to_ptr.vmem [resolvable:$true] %s23_s13 }
   0xa   :  { %26 = dma.hbm_to_vmem [thread:$0]  %s22_s10, 128, %s24_s13, [#allocation4]  }
   0xb   :  { %s48_s17 = sshll.u32 %s579_s1, 4  ;;  %s580_s18 = smov 64   ;;  %s49_s17 = int_to_ptr.vmem [resolvable:$true] %s48_s17 }
   0xc   :  { %s581_s19 = smov 4  }
   0xd   :  { %54 = dma.hbm_to_vmem [thread:$0]  %s47_s16, 2048, %s49_s17, [#allocation6], %s580_s18, %s580_s18, %s581_s19  }
   0xe   :  { %571 = dma.done.wait [#allocation4], 128  }
   0xf   :  { %572 = vsyncadd [#allocation4], 4294967168 }
  0x10   :  { %573 = dma.done.wait [#allocation6], 3072  }
  0x11   :  { %574 = vsyncadd [#allocation6], 4294964224  ;;  %v388_v1 = vld [vmem:[#allocation5 + $0x30] sm:$0xf]  ;;  %v468_v2 = vld [vmem:[#allocation5 + $0x34] sm:$0xf0] }
  0x12   :  { %v467_v3 = vld [vmem:[#allocation5 + $0x34] sm:$0xf]  ;;  %v389_v4 = vor.u32 %v468_v2, %v388_v1  ;;  %v390_v5 = vld [vmem:[#allocation5 + $0x38] sm:$0xf0]  ;;  %v380_v6 = vld [vmem:[#allocation5 + $0x20] sm:$0xf] }
  0x13   :  { %v466_v7 = vld [vmem:[#allocation5 + $0x24] sm:$0xf0]  ;;  %v393_v8 = vor.u32 %v467_v3, %v390_v5  ;;  %v465_v9 = vld [vmem:[#allocation5 + $0x24] sm:$0xf]  ;;  %v382_v10 = vld [vmem:[#allocation5 + $0x28] sm:$0xf0] }
  0x14   :  { %138 = vmatpush.bf16.msra.mxu0 %v389_v4  ;;  %v381_v11 = vor.u32 %v466_v7, %v380_v6  ;;  %v385_v12 = vor.u32 %v465_v9, %v382_v10  ;;  %v372_v13 = vld [vmem:[#allocation5 + $0x10] sm:$0xf]  ;;  %v464_v14 = vld [vmem:[#allocation5 + $0x14] sm:$0xf0]  ;;  %v463_v15 = vld [vmem:[#allocation5 + $0x14] sm:$0xf] }
  0x15   :  { %151 = vmatpush.bf16.msra.mxu1 %v393_v8  ;;  %v374_v16 = vld [vmem:[#allocation5 + $0x18] sm:$0xf0]  ;;  %v373_v19 = vor.u32 %v464_v14, %v372_v13  ;;  %v475_v20 = vld [vmem:[#allocation7 + $0x30] sm:$0xff]  ;;  %v364_v22 = vld [vmem:[#allocation5] sm:$0xf]  ;;  %vm130_vm0 = vcmask 523264  }
  0x16   :  { %v476_v17 = vld [vmem:[#allocation7 + $0x38] sm:$0xff]  ;;  %v377_v21 = vor.u32 %v463_v15, %v374_v16  ;;  %v462_v23 = vld [vmem:[#allocation5 + $0x4] sm:$0xf0]  ;;  %v483_v24 = vld [vmem:[#allocation7 + $0x70] sm:$0xff]  ;;  %vm354_vm4 = vcmask 7168  }
  0x17   :  { %v484_v18 = vld [vmem:[#allocation7 + $0x78] sm:$0xff]  ;;  %296 = vmatpush.bf16.msra.mxu2 %v476_v17  ;;  %v461_v25 = vld [vmem:[#allocation5 + $0x4] sm:$0xf]  ;;  %v366_v26 = vld [vmem:[#allocation5 + $0x8] sm:$0xf0]  ;;  %v365_v27 = vor.u32 %v462_v23, %v364_v22 }
  0x18   :  { %139 = vmatpush.bf16.msra.mxu0 %v381_v11  ;;  %309 = vmatpush.bf16.msra.mxu3 %v484_v18  ;;  %v74_v28 = vld [vmem:[#allocation3] sm:$0xff]  ;;  %v474_v29 = vld [vmem:[#allocation7 + $0x28] sm:$0xff]  ;;  %v369_v30 = vor.u32 %v461_v25, %v366_v26  ;;  %v473_v33 = vld [vmem:[#allocation7 + $0x20] sm:$0xff] }
  0x19   :  { %152 = vmatpush.bf16.msra.mxu1 %v385_v12  ;;  %v482_v31 = vld [vmem:[#allocation7 + $0x68] sm:$0xff]  ;;  %v75_v32 = vpack.c.bf16 %v74_v28, %v74_v28  ;;  %v481_v34 = vld [vmem:[#allocation7 + $0x60] sm:$0xff]  ;;  %v472_v35 = vld [vmem:[#allocation7 + $0x18] sm:$0xff] }
  0x1a   :  { %v480_v36 = vld [vmem:[#allocation7 + $0x58] sm:$0xff]  ;;  %v471_v37 = vld [vmem:[#allocation7 + $0x10] sm:$0xff]  ;;  %v470_v39 = vld [vmem:[#allocation7 + $0x8] sm:$0xff] }
  0x1b   :  { %297 = vmatpush.bf16.msra.mxu2 %v475_v20  ;;  %v479_v38 = vld [vmem:[#allocation7 + $0x50] sm:$0xff]  ;;  %v478_v40 = vld [vmem:[#allocation7 + $0x48] sm:$0xff]  ;;  %v469_v41 = vld [vmem:[#allocation7] sm:$0xff] }
  0x1c   :  { %140 = vmatpush.bf16.msra.mxu0 %v373_v19  ;;  %310 = vmatpush.bf16.msra.mxu3 %v483_v24  ;;  %v477_v42 = vld [vmem:[#allocation7 + $0x40] sm:$0xff]  ;;  %v84_v43 = vld [vmem:[%s648_s2] sm:$0x3] }
  0x1d   :  { %153 = vmatpush.bf16.msra.mxu1 %v377_v21  ;;  %v86_v44 = vperm.slane %v84_v43, 0  ;;  %v87_v45 = vperm.slane %v84_v43, 1  ;;  %v492_v56 = vld [vmem:[%s650_s4] ss:$0 sm:$0xff] }
  0x1e   :  { %v493_v61 = vld [vmem:[%s651_s5] ss:$0 sm:$0xff] }
  0x1f   :  { %298 = vmatpush.bf16.msra.mxu2 %v474_v29  ;;  %v494_v2 = vld [vmem:[#allocation2] ss:$0 sm:$0xff] }
  0x20   :  { %141 = vmatpush.bf16.msra.mxu0 %v365_v27  ;;  %311 = vmatpush.bf16.msra.mxu3 %v482_v31 }
  0x21   :  { %154 = vmatpush.bf16.msra.mxu1 %v369_v30 }
  0x23   :  { %394 = vmatmul.msk.bf16.vlgmr.msra.gmra.mxu0 %vm130_vm0, %v75_v32  ;;  %299 = vmatpush.bf16.msra.mxu2 %v473_v33 }
  0x24   :  { %395 = vmatmul.msk.bf16.vlgmr.msra.gmra.mxu1 %vm130_vm0, %v75_v32  ;;  %312 = vmatpush.bf16.msra.mxu3 %v481_v34 }
  0x27   :  { %300 = vmatpush.bf16.msra.mxu2 %v472_v35 }
  0x28   :  { %313 = vmatpush.bf16.msra.mxu3 %v480_v36 }
  0x2b   :  { %301 = vmatpush.bf16.msra.mxu2 %v471_v37 }
  0x2c   :  { %314 = vmatpush.bf16.msra.mxu3 %v479_v38 }
  0x2f   :  { %302 = vmatpush.bf16.msra.mxu2 %v470_v39 }
  0x30   :  { %315 = vmatpush.bf16.msra.mxu3 %v478_v40 }
  0x33   :  { %303 = vmatpush.bf16.msra.mxu2 %v469_v41 }
  0x34   :  { %316 = vmatpush.bf16.msra.mxu3 %v477_v42 }
  0xa0   :  { %v143_v46 = vpop.f32.mrf.mxu0 }
  0xa1   :  { %v144_v47 = vadd.f32 %v143_v46, %v86_v44  ;;  %v156_v48 = vpop.f32.mrf.mxu1 }
  0xa2   :  { %v157_v49 = vadd.f32 %v156_v48, %v87_v45 }
  0xa3   :  { %v160_v50 = vmax.f32 %v144_v47, 0.0 }
  0xa4   :  { %v161_v51 = vmax.f32 %v157_v49, 0.0 }
  0xa5   :  { %v162_v52 = vpack.c.bf16 %v160_v50, %v160_v50 }
  0xa6   :  { %v163_v53 = vpack.c.bf16 %v161_v51, %v161_v51 }
  0xa7   :  { %304 = vmatmul.bf16.vlgmr.msra.gmra.mxu2 %v162_v52 }
  0xa8   :  { %317 = vmatmul.bf16.vlgmr.msra.gmra.mxu3 %v163_v53  ;;  %v145_v54 = vpop.f32.mrf.mxu0 }
  0xa9   :  { %v158_v55 = vpop.f32.mrf.mxu1 }
 0x12a   :  { %v305_v57 = vpop.f32.mrf.mxu2 }
 0x12b   :  { %v306_v58 = vadd.f32 %v492_v56, %v305_v57  ;;  %v318_v59 = vpop.f32.mrf.mxu3 }
 0x12d   :  { %v319_v60 = vadd.f32 %v318_v59, %v306_v58 }
 0x12f   :  { %v322_v62 = vmax.f32 %v319_v60, 0.0 }
 0x131   :  { %v327_v63 = vmul.f32 %v493_v61, %v322_v62 }
 0x132   :  { %v307_v0 = vpop.f32.mrf.mxu2 }
 0x133   :  { %v320_v1 = vpop.f32.mrf.mxu3  ;;  %328 = vadd.xlane.f32.xlu0 %v327_v63 }
 0x1a6   :  { %v329_v3 = vpop.xlane.xlu0 %328 }
 0x1a7   :  { %v334_v4 = vadd.f32 %v494_v2, %v329_v3 }
 0x1a9   :  { %v460_v5 = vmul.f32 -1.442695, %v334_v4 }
 0x1ab   :  { %495 = vpow2.f32 %v460_v5 }
 0x1b1   :  { %v496_v6 = vpop.eup %495 }
 0x1b2   :  { %v338_v7 = vadd.f32 1.0, %v496_v6 }
 0x1b4   :  { %497 = vrcp.f32 %v338_v7  ;;  %v350_v11 = vand.u32 2147483648, %v338_v7  ;;  %v348_v13 = vand.u32 2147483647, %v338_v7  ;;  %vm344_vm2 = vweird.f32 %v338_v7 }
 0x1b6   :  { %v351_v15 = vor.u32 1.1754944e-38, %v350_v11  ;;  %vm349_vm5 = vcmp.eq.f32.partialorder %v348_v13, 8.507059e+37 }
 0x1ba   :  { %v498_v8 = vpop.eup %497 }
 0x1bb   :  { %v340_v9 = vmul.f32 %v498_v8, %v338_v7  ;;  %vm345_vm1 = vweird.f32 %v498_v8 }
 0x1bc   :  { %vm346_vm3 = vmor %vm344_vm2, %vm345_vm1 }
 0x1bd   :  { %v341_v10 = vsub.f32 1.0, %v340_v9 }
 0x1bf   :  { %v342_v12 = vmul.f32 %v498_v8, %v341_v10 }
 0x1c1   :  { %v343_v14 = vadd.f32 %v498_v8, %v342_v12 }
 0x1c3   :  { %v347_v16 = vsel %vm346_vm3, %v498_v8, %v343_v14 }
 0x1c4   :  { %v352_v17 = vsel %vm349_vm5, %v351_v15, %v347_v16 }
 0x1c5   :  { %355 = vst.msk [vmem:[%s653_s7] sm:$0xff] %vm354_vm4, %v352_v17 }
 0x1c6   :  { %360 = vsyncpa [#allocation4], 1 }
 0x1c7   :  { %361 = vsyncpa [#allocation6], 1 }

</bundles_post_ra>
